<compile_context>
chip_gen: v7x
topology: tpu7x:2x2x1
jax: 0.10.0
libtpu: 0.0.40
codegen_flags: <defaults>
</compile_context>

<pallas_src>
import functools

import jax
import jax.numpy as jnp
from jax.experimental import pallas as pl
from jax.experimental.pallas import tpu as pltpu


def _round_up(n, m):
    return ((n + m - 1) // m) * m


_HAS_BUFFERED = hasattr(pl, "Buffered")


def _resident_spec(block_shape, index_map):
    """BlockSpec for an operand with a constant index map (kept resident)."""
    if _HAS_BUFFERED:
        try:
            return pl.BlockSpec(block_shape, index_map,
                                pipeline_mode=pl.Buffered(buffer_count=1))
        except TypeError:
            pass
    return pl.BlockSpec(block_shape, index_map)


def _device_kind():
    try:
        return jax.devices()[0].device_kind.lower()
    except Exception:
        return ""


def _vmem_capacity_bytes():
    try:
        info = pltpu.get_tpu_info()
        cap = getattr(info, "vmem_capacity_bytes", None)
        if cap:
            return int(cap)
    except Exception:
        pass
    kind = _device_kind()
    return (64 << 20) if "v7" in kind else (128 << 20)


# ----------------------------------------------------------------------------
# Kernels
# ----------------------------------------------------------------------------
def _head_kernel(x_ref, w1_ref, b1_ref, w2_ref, b2_ref, o_ref):
    # x_ref: (tm, D) input dtype; w1_ref: (D, D) bf16; b1_ref: (1, D) f32
    # w2_ref: (D, Lp) bf16; b2_ref: (1, Lp) f32; o_ref: (tm, Lp) input dtype
    x = x_ref[...].astype(w1_ref.dtype)           # cast hides under the MXU
    h = jnp.dot(x, w1_ref[...], preferred_element_type=jnp.float32)
    h = jnp.maximum(h + b1_ref[...], 0.0)          # bias + ReLU on the VPU (f32)
    # Dropout: eval-mode identity (no mask, no scaling).
    y = jnp.dot(h.astype(w2_ref.dtype), w2_ref[...],
                preferred_element_type=jnp.float32)
    o_ref[...] = (y + b2_ref[...]).astype(o_ref.dtype)


def _head_kernel_ktiled(x_ref, w1_ref, b1_ref, w2_ref, b2_ref, o_ref, acc_ref):
    # Grid: (M tiles, K tiles).  x_ref: (tm, tk); w1_ref: (tk, D);
    # acc_ref: (tm, D) f32 scratch; epilogue on the last K step.
    k = pl.program_id(1)

    @pl.when(k == 0)
    def _():
        acc_ref[...] = jnp.zeros_like(acc_ref)

    x = x_ref[...].astype(w1_ref.dtype)
    acc_ref[...] += jnp.dot(x, w1_ref[...], preferred_element_type=jnp.float32)

    @pl.when(k == pl.num_programs(1) - 1)
    def _():
        h = jnp.maximum(acc_ref[...] + b1_ref[...], 0.0)
        y = jnp.dot(h.astype(w2_ref.dtype), w2_ref[...],
                    preferred_element_type=jnp.float32)
        o_ref[...] = (y + b2_ref[...]).astype(o_ref.dtype)


# ----------------------------------------------------------------------------
# Pallas call (jitted core)
# ----------------------------------------------------------------------------
@functools.partial(
    jax.jit,
    static_argnames=("num_labels", "tm", "tk", "use_ktiled", "vmem_limit"))
def _head_forward(x2d, w1q, b1q, w2q, b2q, *, num_labels, tm, tk, use_ktiled,
                  vmem_limit):
    M, D = x2d.shape
    Lp = w2q.shape[1]
    w_isz = w1q.dtype.itemsize
    x_isz = x2d.dtype.itemsize

    Mp = _round_up(M, tm)
    if Mp != M:
        x2d = jnp.pad(x2d, ((0, Mp - M), (0, 0)))

    if use_ktiled:
        grid = (Mp // tm, D // tk)
        in_specs = [
            pl.BlockSpec((tm, tk), lambda i, k: (i, k)),      # x tile (streams K)
            pl.BlockSpec((tk, D), lambda i, k: (k, 0)),       # W1 stripe (streamed)
            _resident_spec((1, D), lambda i, k: (0, 0)),      # b1
            _resident_spec((D, Lp), lambda i, k: (0, 0)),     # W2 (resident)
            _resident_spec((1, Lp), lambda i, k: (0, 0)),     # b2
        ]
        out_specs = pl.BlockSpec((tm, Lp), lambda i, k: (i, 0))
        scratch_shapes = [pltpu.VMEM((tm, D), jnp.float32)]
        kernel = _head_kernel_ktiled
        dims = ("parallel", "arbitrary")
        w1_bytes = (Mp // tm) * D * D * w_isz                 # W1 re-streamed per M tile
    else:
        grid = (Mp // tm,)
        in_specs = [
            pl.BlockSpec((tm, D), lambda i: (i, 0)),          # x row tile
            _resident_spec((D, D), lambda i: (0, 0)),         # W1 (resident, 1 buffer)
            _resident_spec((1, D), lambda i: (0, 0)),         # b1
            _resident_spec((D, Lp), lambda i: (0, 0)),        # W2 (resident)
            _resident_spec((1, Lp), lambda i: (0, 0)),        # b2
        ]
        out_specs = pl.BlockSpec((tm, Lp), lambda i: (i, 0))
        scratch_shapes = []
        kernel = _head_kernel
        dims = ("parallel",)
        w1_bytes = D * D * w_isz

    cost = pl.CostEstimate(
        flops=2 * Mp * D * D + 2 * Mp * D * Lp,
        transcendentals=0,
        bytes_accessed=(Mp * D * x_isz + w1_bytes + D * Lp * w_isz
                        + Mp * Lp * x_isz + (D + Lp) * 4),
    )

    out = pl.pallas_call(
        kernel,
        out_shape=jax.ShapeDtypeStruct((Mp, Lp), x2d.dtype),
        grid_spec=pltpu.PrefetchScalarGridSpec(
            num_scalar_prefetch=0,
            grid=grid,
            in_specs=in_specs,
            out_specs=out_specs,
            scratch_shapes=scratch_shapes),
        compiler_params=pltpu.CompilerParams(
            dimension_semantics=dims,
            vmem_limit_bytes=vmem_limit),
        cost_estimate=cost,
    )(x2d, w1q, b1q, w2q, b2q)

    # Strip row padding and label-lane padding (fused into the XLA program).
    return out[:M, :num_labels]


# ----------------------------------------------------------------------------
# Public API
# ----------------------------------------------------------------------------
def prepare_head_params(w_dense_t, b_dense, w_out_t, b_out,
                        compute_dtype=jnp.bfloat16):
    """One-time weight preprocessing (do NOT call per forward pass).

    w_dense_t: [D, D] (already transposed for x @ W), b_dense: [D],
    w_out_t:   [D, L] (already transposed),            b_out:   [L].
    Casts matmul weights to `compute_dtype` and pads the label dimension up to
    a multiple of 128 so output stores are full-lane vst.
    """
    D = w_dense_t.shape[0]
    L = w_out_t.shape[1]
    Lp = _round_up(max(L, 128), 128)
    w1q = jnp.asarray(w_dense_t, compute_dtype)
    w2q = jnp.pad(jnp.asarray(w_out_t, jnp.float32),
                  ((0, 0), (0, Lp - L))).astype(compute_dtype)
    b1q = jnp.asarray(b_dense, jnp.float32).reshape(1, D)
    b2q = jnp.pad(jnp.asarray(b_out, jnp.float32), (0, Lp - L)).reshape(1, Lp)
    return {"w1": w1q, "b1": b1q, "w2": w2q, "b2": b2q,
            "num_labels": int(L), "hidden": int(D)}


def classification_head(x, params, *, tm=None, tk=None):
    """x: [..., D]; params from prepare_head_params.  Returns [..., num_labels]."""
    lead = x.shape[:-1]
    D = x.shape[-1]
    L = params["num_labels"]
    x2d = x.reshape(-1, D)
    M = x2d.shape[0]

    kind = _device_kind()
    is_v5e = ("v5e" in kind) or ("v5 lite" in kind) or ("v5litepod" in kind)
    num_tc = 2 if "v7" in kind else 1
    cap = _vmem_capacity_bytes()

    # Row tile: generation-aware default, clamped to (padded) token count.
    if tm is None:
        tm = 128 if is_v5e else 256
    if num_tc > 1 and M > 128:
        # Keep both v7x TensorCores busy: at least num_tc row tiles when possible.
        tm = min(tm, max(128, _round_up(pl.cdiv(M, num_tc), 128)))
    tm_eff = _round_up(min(tm, _round_up(M, 16)), 16)

    w1q, b1q, w2q, b2q = params["w1"], params["b1"], params["w2"], params["b2"]
    Lp = w2q.shape[1]
    w_isz = w1q.dtype.itemsize
    x_isz = x2d.dtype.itemsize

    # Decide fused (resident W1) vs. K-tiled (streamed W1) from the VMEM budget.
    w_bufs = 1 if _HAS_BUFFERED else 2
    resident = (D * D + D * Lp) * w_isz * w_bufs
    tiles = 2 * tm_eff * D * x_isz + 2 * tm_eff * Lp * x_isz
    budget = cap - (16 << 20)
    use_ktiled = (tk is not None) or (resident + tiles > budget)
    if use_ktiled and D % 128 == 0:
        if tk is None or D % tk != 0:
            tk = 512 if D % 512 == 0 else 128
        needed = (2 * tk * D * w_isz + D * Lp * w_isz * w_bufs
                  + 2 * tm_eff * tk * x_isz + tm_eff * D * 4
                  + 2 * tm_eff * Lp * x_isz + 2 * (D + Lp) * 4 + (8 << 20))
    else:
        use_ktiled = False
        tk = 0
        needed = resident + tiles + 2 * (D + Lp) * 4 + (8 << 20)

    vmem_limit = int(min(max(needed, 32 << 20), cap - (8 << 20)))

    out2d = _head_forward(x2d, w1q, b1q, w2q, b2q,
                          num_labels=L, tm=tm_eff, tk=tk,
                          use_ktiled=use_ktiled, vmem_limit=vmem_limit)
    return out2d.reshape(*lead, L)


def init_params(key, hidden, num_labels, init_std=0.02):
    """Matches the PyTorch init: weights ~ N(0, init_std), biases = 0."""
    k1, k2 = jax.random.split(key)
    # PyTorch nn.Linear weight is (out, in) and computes x @ W.T; store transposed.
    w_dense = jax.random.normal(k1, (hidden, hidden), jnp.float32) * init_std
    b_dense = jnp.zeros((hidden,), jnp.float32)
    w_out = jax.random.normal(k2, (num_labels, hidden), jnp.float32) * init_std
    b_out = jnp.zeros((num_labels,), jnp.float32)
    return w_dense.T, b_dense, w_out.T, b_out


if __name__ == "__main__":
    # --- small-shape check (fused, resident-weight path) ---------------------
    batch, seq, hidden, num_labels = 2, 8, 32, 4
    key = jax.random.PRNGKey(0)
    kx, kp = jax.random.split(key)

    x = jax.random.normal(kx, (batch, seq, hidden), jnp.float32)
    w1, b1, w2, b2 = init_params(kp, hidden, num_labels, init_std=0.02)
    params = prepare_head_params(w1, b1, w2, b2)          # one-time weight prep

    out = classification_head(x, params)
    jax.block_until_ready(out)
    assert out.shape == (batch, seq, num_labels)

    ref = (jnp.maximum(x.reshape(-1, hidden) @ w1 + b1, 0.0) @ w2 + b2)
    ref = ref.reshape(batch, seq, num_labels)
    assert jnp.allclose(out, ref, atol=1e-2, rtol=5e-2), "fused path mismatch"

    # --- exercise the K-tiled (large-D / v7x) path at a small shape -----------
    hidden2, labels2, tokens2 = 512, 4, 300
    kx2, kp2 = jax.random.split(jax.random.PRNGKey(1))
    x2 = jax.random.normal(kx2, (tokens2, hidden2), jnp.float32)
    w1b, b1b, w2b, b2b = init_params(kp2, hidden2, labels2, init_std=0.02)
    params2 = prepare_head_params(w1b, b1b, w2b, b2b)
    out2 = classification_head(x2, params2, tk=256)        # force K-tiled path
    jax.block_until_ready(out2)
    ref2 = jnp.maximum(x2 @ w1b + b1b, 0.0) @ w2b + b2b
    assert jnp.allclose(out2, ref2, atol=2e-2, rtol=5e-2), "k-tiled path mismatch"

    print("KERNEL_OK")
</pallas_src>

<mosaic_0001>
module attributes {stable_mosaic.version = 11 : i64} {
  func.func @_head_kernel(%arg0: i32, %arg1: memref<16x32xf32, #tpu.memory_space<vmem>>, %arg2: memref<32x32xbf16, #tpu.memory_space<vmem>>, %arg3: memref<1x32xf32, #tpu.memory_space<vmem>>, %arg4: memref<32x128xbf16, #tpu.memory_space<vmem>>, %arg5: memref<1x128xf32, #tpu.memory_space<vmem>>, %arg6: memref<16x128xf32, #tpu.memory_space<vmem>>) attributes {dimension_semantics = [#tpu.dimension_semantics<parallel>], iteration_bounds = array<i64: 1>, scalar_prefetch = 0 : i64, scratch_operands = 0 : i64, tpu.core_type = #tpu.core_type<tc>, window_params = [{transform_indices = @transform_0, window_bounds = array<i64: 16, 32>}, {pipeline_mode = #tpu.pipeline_mode<synchronous>, transform_indices = @transform_1, window_bounds = array<i64: 32, 32>}, {pipeline_mode = #tpu.pipeline_mode<synchronous>, transform_indices = @transform_2, window_bounds = array<i64: 1, 32>}, {pipeline_mode = #tpu.pipeline_mode<synchronous>, transform_indices = @transform_3, window_bounds = array<i64: 32, 128>}, {pipeline_mode = #tpu.pipeline_mode<synchronous>, transform_indices = @transform_4, window_bounds = array<i64: 1, 128>}, {transform_indices = @transform_5, window_bounds = array<i64: 16, 128>}]} {
    %c0 = arith.constant 0 : index
    %c0_0 = arith.constant 0 : index
    %0 = vector.load %arg1[%c0, %c0_0] : memref<16x32xf32, #tpu.memory_space<vmem>>, vector<16x32xf32>
    %1 = arith.truncf %0 : vector<16x32xf32> to vector<16x32xbf16>
    %c0_1 = arith.constant 0 : index
    %c0_2 = arith.constant 0 : index
    %2 = vector.load %arg2[%c0_1, %c0_2] : memref<32x32xbf16, #tpu.memory_space<vmem>>, vector<32x32xbf16>
    %cst = arith.constant dense<0.000000e+00> : vector<16x32xf32>
    %3 = tpu.matmul %1, %2, %cst {dimension_numbers = #tpu.dot_dimension_numbers<[1], [0], [0], [1], [0, 0, 1, 1], [], []>} : vector<16x32xbf16>, vector<32x32xbf16>, vector<16x32xf32> -> vector<16x32xf32>
    %c0_3 = arith.constant 0 : index
    %c0_4 = arith.constant 0 : index
    %4 = vector.load %arg3[%c0_3, %c0_4] : memref<1x32xf32, #tpu.memory_space<vmem>>, vector<1x32xf32>
    %5 = vector.broadcast %4 : vector<1x32xf32> to vector<16x32xf32>
    %6 = arith.addf %3, %5 : vector<16x32xf32>
    %cst_5 = arith.constant 0.000000e+00 : f32
    %7 = vector.broadcast %cst_5 : f32 to vector<16x32xf32>
    %8 = arith.maximumf %6, %7 : vector<16x32xf32>
    %9 = arith.truncf %8 : vector<16x32xf32> to vector<16x32xbf16>
    %c0_6 = arith.constant 0 : index
    %c0_7 = arith.constant 0 : index
    %10 = vector.load %arg4[%c0_6, %c0_7] : memref<32x128xbf16, #tpu.memory_space<vmem>>, vector<32x128xbf16>
    %cst_8 = arith.constant dense<0.000000e+00> : vector<16x128xf32>
    %11 = tpu.matmul %9, %10, %cst_8 {dimension_numbers = #tpu.dot_dimension_numbers<[1], [0], [0], [1], [0, 0, 1, 1], [], []>} : vector<16x32xbf16>, vector<32x128xbf16>, vector<16x128xf32> -> vector<16x128xf32>
    %c0_9 = arith.constant 0 : index
    %c0_10 = arith.constant 0 : index
    %12 = vector.load %arg5[%c0_9, %c0_10] : memref<1x128xf32, #tpu.memory_space<vmem>>, vector<1x128xf32>
    %13 = vector.broadcast %12 : vector<1x128xf32> to vector<16x128xf32>
    %14 = arith.addf %11, %13 : vector<16x128xf32>
    %c0_11 = arith.constant 0 : index
    %c0_12 = arith.constant 0 : index
    %15 = vector.load %arg6[%c0_11, %c0_12] : memref<16x128xf32, #tpu.memory_space<vmem>>, vector<16x128xf32>
    tpu.vector_store %arg6[%c0_11, %c0_12], %14 {strides = array<i32>} : memref<16x128xf32, #tpu.memory_space<vmem>>, vector<16x128xf32>,
    return
  }
  func.func @transform_0(%arg0: i32) -> (i32, i32) {
    %c0_i32 = arith.constant 0 : i32
    %c0_i32_0 = arith.constant 0 : i32
    return %arg0, %c0_i32 : i32, i32
  }
  func.func @transform_1(%arg0: i32) -> (i32, i32) {
    %c0_i32 = arith.constant 0 : i32
    %c0_i32_0 = arith.constant 0 : i32
    %c0_i32_1 = arith.constant 0 : i32
    return %c0_i32, %c0_i32_0 : i32, i32
  }
  func.func @transform_2(%arg0: i32) -> (i32, i32) {
    %c0_i32 = arith.constant 0 : i32
    %c0_i32_0 = arith.constant 0 : i32
    %c0_i32_1 = arith.constant 0 : i32
    return %c0_i32, %c0_i32_0 : i32, i32
  }
  func.func @transform_3(%arg0: i32) -> (i32, i32) {
    %c0_i32 = arith.constant 0 : i32
    %c0_i32_0 = arith.constant 0 : i32
    %c0_i32_1 = arith.constant 0 : i32
    return %c0_i32, %c0_i32_0 : i32, i32
  }
  func.func @transform_4(%arg0: i32) -> (i32, i32) {
    %c0_i32 = arith.constant 0 : i32
    %c0_i32_0 = arith.constant 0 : i32
    %c0_i32_1 = arith.constant 0 : i32
    return %c0_i32, %c0_i32_0 : i32, i32
  }
  func.func @transform_5(%arg0: i32) -> (i32, i32) {
    %c0_i32 = arith.constant 0 : i32
    %c0_i32_0 = arith.constant 0 : i32
    return %arg0, %c0_i32 : i32, i32
  }
}

</mosaic_0001>

<bundles_post_ra>
// kernel: _head_forward.1
= control target key start
LH: loop header
LB: loop body
LE: loop exit
PB: predicated region body
PF: predicated region fallthrough
CT: control target
= control target key end

     0   :  { %10 = vsyncpa [#allocation3], 0  ;;  %s419_s0 = inlined_call_operand.hbm [shape: f32[16,32], index: 0, kind: input, shape index: {}]   ;;  %s420_s1 = inlined_call_operand.hbm [shape: bf16[32,32], index: 1, kind: input, shape index: {}]   ;;  %s421_s2 = inlined_call_operand.vmem [shape: f32[1,32], index: 2, kind: input, shape index: {}]   ;;  %s422_s3 = inlined_call_operand.hbm [shape: bf16[32,128], index: 3, kind: input, shape index: {}]   ;;  %s423_s4 = inlined_call_operand.vmem [shape: f32[1,128], index: 4, kind: input, shape index: {}]   ;;  %s424_s5 = inlined_call_operand.vmem [shape: f32[16,128], index: 5, kind: output, shape index: {}]  }
   0x1   :  { %11 = vsyncpa [#allocation5], 0  ;;  %s324_s18 = smov [#allocation4]   ;;  %s254_s22 = scalar_lea.hbm %s420_s1, 256 }
   0x2   :  { %s29_s19 = sshll.u32 %s324_s18, 4  ;;  %p255_p0 = scmp.ne.s32.totalorder %s420_s1, %s254_s22  ;;  %s30_s19 = int_to_ptr.vmem [resolvable:$true] %s29_s19 }
   0x3   :  { %p258_p1 = scmp.lt.u32.totalorder %s254_s22, %s420_s1 }
   0x5   :  { %p260_p2 = pnand %p258_p1, %p255_p0 }
   0x7   :  { %263 = shalt.err (!%p260_p2)
}
   0x8   :  { %s264_s27 = scalar_lea.vmem %s30_s19, 256  ;;  %p269_p4 = scmp.lt.s32.totalorder %s30_s19, %s30_s19 }
   0x9   :  { %p265_p3 = scmp.ne.s32.totalorder %s30_s19, %s264_s27  ;;  %p270_p5 = scmp.lt.s32.totalorder %s264_s27, %s264_s27 }
   0xb   :  { %p271_p6 = por %p270_p5, %p269_p4 }
   0xd   :  { %p272_p7 = pnand %p271_p6, %p265_p3 }
   0xf   :  { %275 = shalt.err (!%p272_p7)
}
  0x10   :  { %s325_s28 = smov 64   ;;  %s326_s29 = smov 4  }
  0x11   :  { %35 = dma.hbm_to_vmem [thread:$0]  %s420_s1, 256, %s30_s19, [#allocation5], %s325_s28, %s325_s28, %s326_s29  }
  0x12   :  { %s327_s7 = smov [#allocation2]   ;;  %s276_s11 = scalar_lea.hbm %s419_s0, 256 }
  0x13   :  { %s17_s8 = sshll.u32 %s327_s7, 4  ;;  %p277_p8 = scmp.ne.s32.totalorder %s419_s0, %s276_s11  ;;  %s18_s8 = int_to_ptr.vmem [resolvable:$true] %s17_s8 }
  0x14   :  { %p280_p9 = scmp.lt.u32.totalorder %s276_s11, %s419_s0 }
  0x16   :  { %p282_p10 = pnand %p280_p9, %p277_p8 }
  0x18   :  { %285 = shalt.err (!%p282_p10)
}
  0x19   :  { %s286_s16 = scalar_lea.vmem %s18_s8, 256  ;;  %p291_p12 = scmp.lt.s32.totalorder %s18_s8, %s18_s8 }
  0x1a   :  { %p287_p11 = scmp.ne.s32.totalorder %s18_s8, %s286_s16  ;;  %p292_p13 = scmp.lt.s32.totalorder %s286_s16, %s286_s16 }
  0x1c   :  { %p293_p0 = por %p292_p13, %p291_p12 }
  0x1e   :  { %p294_p1 = pnand %p293_p0, %p287_p11 }
  0x20   :  { %297 = shalt.err (!%p294_p1)
}
  0x21   :  { %s328_s1 = smov 128   ;;  %s329_s17 = smov 8  }
  0x22   :  { %23 = dma.hbm_to_vmem [thread:$0]  %s419_s0, 256, %s18_s8, [#allocation3], %s328_s1, %s328_s1, %s329_s17  }
  0x23   :  { %s330_s20 = smov [#allocation6]   ;;  %s298_s24 = scalar_lea.hbm %s422_s3, 256 }
  0x24   :  { %s43_s21 = sshll.u32 %s330_s20, 4  ;;  %p299_p2 = scmp.ne.s32.totalorder %s422_s3, %s298_s24  ;;  %s44_s21 = int_to_ptr.vmem [resolvable:$true] %s43_s21 }
  0x25   :  { %p302_p3 = scmp.lt.u32.totalorder %s298_s24, %s422_s3 }
  0x27   :  { %p304_p4 = pnand %p302_p3, %p299_p2 }
  0x29   :  { %307 = shalt.err (!%p304_p4)
}
  0x2a   :  { %s308_s6 = scalar_lea.vmem %s44_s21, 256  ;;  %p313_p6 = scmp.lt.s32.totalorder %s44_s21, %s44_s21 }
  0x2b   :  { %p309_p5 = scmp.ne.s32.totalorder %s44_s21, %s308_s6  ;;  %p314_p7 = scmp.lt.s32.totalorder %s308_s6, %s308_s6 }
  0x2d   :  { %p315_p8 = por %p314_p7, %p313_p6 }
  0x2f   :  { %p316_p9 = pnand %p315_p8, %p309_p5 }
  0x31   :  { %319 = shalt.err (!%p316_p9)
}
  0x32   :  { %49 = dma.hbm_to_vmem [thread:$0]  %s422_s3, 256, %s44_s21, [#allocation5], %s325_s28, %s325_s28, %s326_s29  }
  0x33   :  { %320 = dma.done.wait [#allocation3], 256  }
  0x34   :  { %321 = vsyncadd [#allocation3], 4294967040 }
  0x35   :  { %322 = dma.done.wait [#allocation5], 512  }
  0x36   :  { %323 = vsyncadd [#allocation5], 4294966784  ;;  %v331_v0 = vmov 0.0   ;;  %vm332_vm0 = vmmov 0   ;;  %v250_v1 = vld [vmem:[#allocation4] sm:$0xff]   ;;  %v251_v2 = vld [vmem:[#allocation4 + $0x8] sm:$0xff]  }
  0x37   :  { %225 = vmatprep.subr.bf16.mxu0 %v331_v0  ;;  %229 = vmatprep.mubr.msk.bf16.mxu0 %vm332_vm0, %v331_v0  ;;  %v62_v3 = vld [vmem:[#allocation2] sm:$0xff]  ;;  %v63_v4 = vld [vmem:[#allocation2 + $0x8] sm:$0xff]  ;;  %vm88_vm1 = vcmask 261120  }
  0x38   :  { %233 = vmatprep.subr.bf16.mxu1 %v331_v0  ;;  %237 = vmatprep.mubr.msk.bf16.mxu1 %vm332_vm0, %v331_v0  ;;  %v64_v5 = vpack.c.bf16 %v63_v4, %v62_v3  ;;  %v252_v6 = vld [vmem:[#allocation6] sm:$0xff]   ;;  %v253_v7 = vld [vmem:[#allocation6 + $0x8] sm:$0xff]  }
  0x39   :  { %226 = vmatpush3.bf16.msra.mxu0 %v250_v1  ;;  %234 = vmatpush3.bf16.msra.mxu1 %v252_v6  ;;  %v211_v8 = vld [vmem:[%s421_s2] ss:$0 sm:$0xff] }
  0x3a   :  { %227 = vmatprep.subr.bf16.mxu0 %v331_v0  ;;  %235 = vmatprep.subr.bf16.mxu1 %v331_v0  ;;  %v215_v18 = vld [vmem:[%s423_s4] ss:$0 sm:$0xff] }
  0x3d   :  { %228 = vmatpush3.bf16.msra.mxu0 %v251_v2  ;;  %236 = vmatpush3.bf16.msra.mxu1 %v253_v7 }
  0x40   :  { %230 = vmatmul.mubr.msk.bf16.vlgmr.msra.gmra.mrb[0].mxu0 %vm88_vm1, %v64_v5 }
 0x113   :  { %v126_v9 = vpop.f32.mrb[0].mxu0 }
 0x114   :  { %v127_v10 = vadd.f32 %v211_v8, %v126_v9  ;;  %v231_v11 = vpop.f32.mrb[1].mxu0 }
 0x115   :  { %v129_v12 = vpop.f32.mrb[2].mxu0 }
 0x116   :  { %v130_v13 = vadd.f32 %v211_v8, %v129_v12  ;;  %v232_v14 = vpop.f32.mrb[3].mxu0  ;;  %v133_v15 = vmax.f32 %v127_v10, 0.0 }
 0x118   :  { %v134_v16 = vmax.f32 %v130_v13, 0.0 }
 0x11a   :  { %v135_v17 = vpack.c.bf16 %v134_v16, %v133_v15 }
 0x11c   :  { %238 = vmatmul.mubr.msk.bf16.vlgmr.msra.gmra.mrb[0].mxu1 %vm88_vm1, %v135_v17 }
 0x1ef   :  { %v196_v19 = vpop.f32.mrb[0].mxu1 }
 0x1f0   :  { %v197_v20 = vadd.f32 %v215_v18, %v196_v19  ;;  %v239_v21 = vpop.f32.mrb[1].mxu1 }
 0x1f1   :  { %v199_v22 = vpop.f32.mrb[2].mxu1 }
 0x1f2   :  { %203 = vst [vmem:[%s424_s5] sm:$0xff] %v197_v20  ;;  %v200_v23 = vadd.f32 %v215_v18, %v199_v22  ;;  %v240_v24 = vpop.f32.mrb[3].mxu1 }
 0x1f4   :  { %204 = vst [vmem:[%s424_s5 + $0x8] sm:$0xff] %v200_v23 }
 0x1f5   :  { %209 = vsyncpa [#allocation3], 1 }
 0x1f6   :  { %210 = vsyncpa [#allocation5], 1 }

</bundles_post_ra>
